<compile_context>
chip_gen: v7x
topology: tpu7x:2x2x1
jax: 0.10.0
libtpu: 0.0.40
codegen_flags: <defaults>
</compile_context>

<pallas_src>
import functools
import math

import jax
import jax.numpy as jnp
import numpy as np
from jax import lax
from jax.experimental import pallas as pl
from jax.experimental.pallas import tpu as pltpu

SUBLANE = 8  # f32 sublane tile


def _round_up(n, m):
    return ((n + m - 1) // m) * m


# ------------------------------ fused kernel ------------------------------- #

def _exodia_fused_kernel(x_ref, slab_ref, out_ref, *, layout, slope, res, scale, P):
    """Single invocation computes the whole network.

    slab_ref holds every (pre-transposed, zero-padded) weight and bias as
    8-row-aligned row blocks of lane width P; `layout` gives the static row
    offsets, so every parameter is a zero-cost static slice of one VMEM ref.
    """

    def lrelu(v):
        return jnp.maximum(v, slope * v)          # single VPU op

    def w(start, rows):                            # (rows, P) weight block
        return slab_ref[start:start + rows, :]

    def b(start):                                  # (1, P) bias row
        return slab_ref[start:start + 1, :]

    def mm(a, m):
        return jnp.dot(a, m, preferred_element_type=jnp.float32)

    h = x_ref[...]
    for kind, offs in layout:
        if kind == "attention":
            wk, wq, wv, bk, bq, bv = offs
            key = mm(h, w(wk, P)) + b(bk)
            query = mm(h, w(wq, P)) + b(bq)
            value = mm(h, w(wv, P)) + b(bv)
            # key @ query.T without materializing a transpose: contract the
            # lane (feature) dim of both operands.
            kq = lax.dot_general(key, query, (((1,), (1,)), ((), ())),
                                 preferred_element_type=jnp.float32) * scale
            kq = kq - jnp.max(kq, axis=1, keepdims=True)
            e = jnp.exp(kq)
            attn = e / jnp.sum(e, axis=1, keepdims=True)   # exact normalization
            out = mm(attn, value)
            if res:
                out = out + h
            h = lrelu(out)
        elif kind == "linear":
            ws, wr, bs = offs
            h = lrelu(mm(h, w(ws, wr)) + b(bs))
        else:  # "linear_out": final projection, no activation
            ws, wr, bs = offs
            h = mm(h, w(ws, wr)) + b(bs)
    out_ref[...] = h


# ---------------------- one-time host-side param packing ------------------- #

def _prep_padded_slab(params, hp):
    """Transpose every weight to (fan_in, fan_out), zero-pad to the f32 tile
    (rows to multiples of 8, lanes to P = round_up(layer_size, 8)) and stack
    everything into ONE (rows, P) slab.  Attention KQV is split into three
    separate row blocks so in-kernel slicing is always lane-offset-0."""
    layer_size = hp["layer_size"]
    P = _round_up(layer_size, SUBLANE)

    blocks = []
    row = [0]

    def add(arr2d):
        arr2d = np.asarray(arr2d, np.float32)
        r = _round_up(arr2d.shape[0], SUBLANE)
        blk = np.zeros((r, P), np.float32)
        blk[:arr2d.shape[0], :arr2d.shape[1]] = arr2d
        start = row[0]
        blocks.append(blk)
        row[0] += r
        return start

    layout = []
    for kind, wt_, b_ in params:
        wnp = np.asarray(wt_, np.float32)
        bnp = np.asarray(b_, np.float32)
        if kind == "attention":
            h = wnp.shape[1]               # in_size == out_size == layer_size
            wt = wnp.T                     # (h, 3h): cols [0:h]=K [h:2h]=Q [2h:]=V
            wk = add(wt[:, 0:h]); wq = add(wt[:, h:2 * h]); wv = add(wt[:, 2 * h:3 * h])
            bk = add(bnp[0:h][None, :]); bq = add(bnp[h:2 * h][None, :])
            bv = add(bnp[2 * h:3 * h][None, :])
            layout.append((kind, (wk, wq, wv, bk, bq, bv)))
        else:
            wt = wnp.T                     # (fan_in, fan_out)
            wr = _round_up(wt.shape[0], SUBLANE)
            ws = add(wt)
            bs = add(bnp[None, :])
            layout.append((kind, (ws, wr, bs)))

    slab = jnp.asarray(np.concatenate(blocks, axis=0))
    in_p = _round_up(np.asarray(params[0][1]).shape[1], SUBLANE)
    return slab, tuple(layout), P, in_p


def make_exodia_forward(params, hp):
    """One-time prep: pack params into a device-resident slab and return a
    jitted forward(x, slab) -> (batch, 1)."""
    slab, layout, P, in_p = _prep_padded_slab(params, hp)
    kernel = functools.partial(
        _exodia_fused_kernel,
        layout=layout,
        slope=float(hp["relu_slope"]),
        res=bool(hp["resnet"]),
        scale=1.0 / math.sqrt(hp["layer_size"]),
        P=P,
    )
    vmem = pl.BlockSpec(memory_space=pltpu.MemorySpace.VMEM)

    @jax.jit
    def forward(x, slab_dev):
        n, f = x.shape
        x_pad = jnp.pad(x.astype(jnp.float32), ((0, 0), (0, in_p - f)))
        y = pl.pallas_call(
            kernel,
            out_shape=jax.ShapeDtypeStruct((n, P), jnp.float32),
            in_specs=[vmem, vmem],
            out_specs=vmem,
        )(x_pad, slab_dev)
        return y[:, :1]                    # only column 0 is real (out_features=1)

    return forward, slab


# ----------------------------- model setup --------------------------------- #

def init_linear(key, fan_in, fan_out):
    # PyTorch nn.Linear default init: U(-1/sqrt(fan_in), 1/sqrt(fan_in))
    kw, kb = jax.random.split(key)
    bound = 1.0 / math.sqrt(fan_in)
    w = jax.random.uniform(kw, (fan_out, fan_in), jnp.float32, -bound, bound)
    b = jax.random.uniform(kb, (fan_out,), jnp.float32, -bound, bound)
    return w, b


def build_exodia_params(key, in_size, hp):
    layer_size = hp["layer_size"]
    layers = hp["layers"]
    attn_idx = hp["attention_layer_idx"]
    params = []
    key, sub = jax.random.split(key)
    params.append(("linear", *init_linear(sub, in_size, layer_size)))
    for i in range(layers - 1):
        key, sub = jax.random.split(key)
        if i != attn_idx:
            params.append(("linear", *init_linear(sub, layer_size, layer_size)))
        else:
            # AttentionLayer: nn.Linear(layer_size, 3*layer_size)
            params.append(("attention", *init_linear(sub, layer_size, 3 * layer_size)))
    key, sub = jax.random.split(key)
    params.append(("linear_out", *init_linear(sub, layer_size, 1)))
    return params


# ------------------------ pure-JAX reference ------------------------------- #

def exodia_forward_ref(x, params, hp):
    slope = hp["relu_slope"]
    res = hp["resnet"]
    h = hp["layer_size"]
    dot = functools.partial(jnp.dot, precision=lax.Precision.HIGHEST)

    def lrelu(v):
        return jnp.where(v >= 0, v, slope * v)

    for kind, w, b in params[:-1]:
        if kind == "linear":
            x = lrelu(dot(x, w.T) + b)
        else:
            kqv = dot(x, w.T) + b
            key, query, value = kqv[:, :h], kqv[:, h:2 * h], kqv[:, 2 * h:]
            kq = dot(key, query.T) / np.sqrt(h)
            kq = jax.nn.softmax(kq, axis=1)
            out = dot(kq, value)
            if res:
                out = out + x
            x = lrelu(out)
    _, w, b = params[-1]
    return dot(x, w.T) + b


# --------------------------------- main ------------------------------------ #

if __name__ == "__main__":
    hp = {
        "layer_size": 32,
        "layers": 3,                 # hidden: Linear, Attention, Linear, then out
        "attention_layer_idx": 0,
        "resnet": True,
        "relu_slope": 0.01,
    }
    in_size = 16
    batch = 8   # attention softmax runs over the batch, so batch is one group

    key = jax.random.PRNGKey(0)
    key, kx, kp = jax.random.split(key, 3)
    x = jax.random.normal(kx, (batch, in_size), dtype=jnp.float32)
    params = build_exodia_params(kp, in_size, hp)

    forward, slab = make_exodia_forward(params, hp)   # one-time packing + jit
    out = jax.block_until_ready(forward(x, slab))

    ref = exodia_forward_ref(x, params, hp)
    assert out.shape == (batch, 1), out.shape
    np.testing.assert_allclose(np.asarray(out), np.asarray(ref),
                               rtol=1e-4, atol=1e-5)
    print("KERNEL_OK")
</pallas_src>

<mosaic_0001>
module attributes {stable_mosaic.version = 11 : i64} {
  func.func @_exodia_fused_kernel(%arg0: memref<8x16xf32, #tpu.memory_space<vmem>>, %arg1: memref<224x32xf32, #tpu.memory_space<vmem>>, %arg2: memref<8x32xf32, #tpu.memory_space<vmem>>) attributes {dimension_semantics = [], scalar_prefetch = 0 : i64, scratch_operands = 0 : i64, tpu.core_type = #tpu.core_type<tc>} {
    %c0 = arith.constant 0 : index
    %c0_0 = arith.constant 0 : index
    %0 = vector.load %arg0[%c0, %c0_0] : memref<8x16xf32, #tpu.memory_space<vmem>>, vector<8x16xf32>
    %c0_1 = arith.constant 0 : index
    %c0_2 = arith.constant 0 : index
    %1 = vector.load %arg1[%c0_1, %c0_2] : memref<224x32xf32, #tpu.memory_space<vmem>>, vector<16x32xf32>
    %cst = arith.constant dense<0.000000e+00> : vector<8x32xf32>
    %2 = tpu.matmul %0, %1, %cst {dimension_numbers = #tpu.dot_dimension_numbers<[1], [0], [0], [1], [0, 0, 1, 1], [], []>} : vector<8x16xf32>, vector<16x32xf32>, vector<8x32xf32> -> vector<8x32xf32>
    %c16 = arith.constant 16 : index
    %c0_3 = arith.constant 0 : index
    %3 = vector.load %arg1[%c16, %c0_3] : memref<224x32xf32, #tpu.memory_space<vmem>>, vector<1x32xf32>
    %4 = vector.broadcast %3 : vector<1x32xf32> to vector<8x32xf32>
    %5 = arith.addf %2, %4 : vector<8x32xf32>
    %cst_4 = arith.constant 0.00999999977 : f32
    %6 = vector.broadcast %cst_4 : f32 to vector<8x32xf32>
    %7 = arith.mulf %6, %5 : vector<8x32xf32>
    %8 = arith.maximumf %5, %7 : vector<8x32xf32>
    %c24 = arith.constant 24 : index
    %c0_5 = arith.constant 0 : index
    %9 = vector.load %arg1[%c24, %c0_5] : memref<224x32xf32, #tpu.memory_space<vmem>>, vector<32x32xf32>
    %cst_6 = arith.constant dense<0.000000e+00> : vector<8x32xf32>
    %10 = tpu.matmul %8, %9, %cst_6 {dimension_numbers = #tpu.dot_dimension_numbers<[1], [0], [0], [1], [0, 0, 1, 1], [], []>} : vector<8x32xf32>, vector<32x32xf32>, vector<8x32xf32> -> vector<8x32xf32>
    %c120 = arith.constant 120 : index
    %c0_7 = arith.constant 0 : index
    %11 = vector.load %arg1[%c120, %c0_7] : memref<224x32xf32, #tpu.memory_space<vmem>>, vector<1x32xf32>
    %12 = vector.broadcast %11 : vector<1x32xf32> to vector<8x32xf32>
    %13 = arith.addf %10, %12 : vector<8x32xf32>
    %c56 = arith.constant 56 : index
    %c0_8 = arith.constant 0 : index
    %14 = vector.load %arg1[%c56, %c0_8] : memref<224x32xf32, #tpu.memory_space<vmem>>, vector<32x32xf32>
    %cst_9 = arith.constant dense<0.000000e+00> : vector<8x32xf32>
    %15 = tpu.matmul %8, %14, %cst_9 {dimension_numbers = #tpu.dot_dimension_numbers<[1], [0], [0], [1], [0, 0, 1, 1], [], []>} : vector<8x32xf32>, vector<32x32xf32>, vector<8x32xf32> -> vector<8x32xf32>
    %c128 = arith.constant 128 : index
    %c0_10 = arith.constant 0 : index
    %16 = vector.load %arg1[%c128, %c0_10] : memref<224x32xf32, #tpu.memory_space<vmem>>, vector<1x32xf32>
    %17 = vector.broadcast %16 : vector<1x32xf32> to vector<8x32xf32>
    %18 = arith.addf %15, %17 : vector<8x32xf32>
    %c88 = arith.constant 88 : index
    %c0_11 = arith.constant 0 : index
    %19 = vector.load %arg1[%c88, %c0_11] : memref<224x32xf32, #tpu.memory_space<vmem>>, vector<32x32xf32>
    %cst_12 = arith.constant dense<0.000000e+00> : vector<8x32xf32>
    %20 = tpu.matmul %8, %19, %cst_12 {dimension_numbers = #tpu.dot_dimension_numbers<[1], [0], [0], [1], [0, 0, 1, 1], [], []>} : vector<8x32xf32>, vector<32x32xf32>, vector<8x32xf32> -> vector<8x32xf32>
    %c136 = arith.constant 136 : index
    %c0_13 = arith.constant 0 : index
    %21 = vector.load %arg1[%c136, %c0_13] : memref<224x32xf32, #tpu.memory_space<vmem>>, vector<1x32xf32>
    %22 = vector.broadcast %21 : vector<1x32xf32> to vector<8x32xf32>
    %23 = arith.addf %20, %22 : vector<8x32xf32>
    %cst_14 = arith.constant dense<0.000000e+00> : vector<8x8xf32>
    %24 = tpu.matmul %13, %18, %cst_14 {dimension_numbers = #tpu.dot_dimension_numbers<[1], [1], [0], [0], [0, 0, 1, 0], [], []>} : vector<8x32xf32>, vector<8x32xf32>, vector<8x8xf32> -> vector<8x8xf32>
    %cst_15 = arith.constant 0.176776692 : f32
    %25 = vector.broadcast %cst_15 : f32 to vector<8x8xf32>
    %26 = arith.mulf %24, %25 : vector<8x8xf32>
    %cst_16 = arith.constant dense<0xFF800000> : vector<8xf32>
    %27 = vector.multi_reduction <maximumf>, %26, %cst_16 [1] : vector<8x8xf32> to vector<8xf32>
    %28 = vector.shape_cast %27 : vector<8xf32> to vector<8x1xf32>
    %29 = vector.broadcast %28 : vector<8x1xf32> to vector<8x8xf32>
    %30 = arith.subf %26, %29 : vector<8x8xf32>
    %31 = math.exp %30 : vector<8x8xf32>
    %cst_17 = arith.constant dense<0.000000e+00> : vector<8xf32>
    %32 = vector.multi_reduction <add>, %31, %cst_17 [1] : vector<8x8xf32> to vector<8xf32>
    %33 = vector.shape_cast %32 : vector<8xf32> to vector<8x1xf32>
    %34 = vector.broadcast %33 : vector<8x1xf32> to vector<8x8xf32>
    %35 = arith.divf %31, %34 : vector<8x8xf32>
    %cst_18 = arith.constant dense<0.000000e+00> : vector<8x32xf32>
    %36 = tpu.matmul %35, %23, %cst_18 {dimension_numbers = #tpu.dot_dimension_numbers<[1], [0], [0], [1], [0, 0, 1, 1], [], []>} : vector<8x8xf32>, vector<8x32xf32>, vector<8x32xf32> -> vector<8x32xf32>
    %37 = arith.addf %36, %8 : vector<8x32xf32>
    %cst_19 = arith.constant 0.00999999977 : f32
    %38 = vector.broadcast %cst_19 : f32 to vector<8x32xf32>
    %39 = arith.mulf %38, %37 : vector<8x32xf32>
    %40 = arith.maximumf %37, %39 : vector<8x32xf32>
    %c144 = arith.constant 144 : index
    %c0_20 = arith.constant 0 : index
    %41 = vector.load %arg1[%c144, %c0_20] : memref<224x32xf32, #tpu.memory_space<vmem>>, vector<32x32xf32>
    %cst_21 = arith.constant dense<0.000000e+00> : vector<8x32xf32>
    %42 = tpu.matmul %40, %41, %cst_21 {dimension_numbers = #tpu.dot_dimension_numbers<[1], [0], [0], [1], [0, 0, 1, 1], [], []>} : vector<8x32xf32>, vector<32x32xf32>, vector<8x32xf32> -> vector<8x32xf32>
    %c176 = arith.constant 176 : index
    %c0_22 = arith.constant 0 : index
    %43 = vector.load %arg1[%c176, %c0_22] : memref<224x32xf32, #tpu.memory_space<vmem>>, vector<1x32xf32>
    %44 = vector.broadcast %43 : vector<1x32xf32> to vector<8x32xf32>
    %45 = arith.addf %42, %44 : vector<8x32xf32>
    %cst_23 = arith.constant 0.00999999977 : f32
    %46 = vector.broadcast %cst_23 : f32 to vector<8x32xf32>
    %47 = arith.mulf %46, %45 : vector<8x32xf32>
    %48 = arith.maximumf %45, %47 : vector<8x32xf32>
    %c184 = arith.constant 184 : index
    %c0_24 = arith.constant 0 : index
    %49 = vector.load %arg1[%c184, %c0_24] : memref<224x32xf32, #tpu.memory_space<vmem>>, vector<32x32xf32>
    %cst_25 = arith.constant dense<0.000000e+00> : vector<8x32xf32>
    %50 = tpu.matmul %48, %49, %cst_25 {dimension_numbers = #tpu.dot_dimension_numbers<[1], [0], [0], [1], [0, 0, 1, 1], [], []>} : vector<8x32xf32>, vector<32x32xf32>, vector<8x32xf32> -> vector<8x32xf32>
    %c216 = arith.constant 216 : index
    %c0_26 = arith.constant 0 : index
    %51 = vector.load %arg1[%c216, %c0_26] : memref<224x32xf32, #tpu.memory_space<vmem>>, vector<1x32xf32>
    %52 = vector.broadcast %51 : vector<1x32xf32> to vector<8x32xf32>
    %53 = arith.addf %50, %52 : vector<8x32xf32>
    %c0_27 = arith.constant 0 : index
    %c0_28 = arith.constant 0 : index
    %54 = vector.load %arg2[%c0_27, %c0_28] : memref<8x32xf32, #tpu.memory_space<vmem>>, vector<8x32xf32>
    tpu.vector_store %arg2[%c0_27, %c0_28], %53 {strides = array<i32>} : memref<8x32xf32, #tpu.memory_space<vmem>>, vector<8x32xf32>,
    return
  }
}

</mosaic_0001>

<bundles_post_ra>
// kernel: forward.1
= control target key start
LH: loop header
LB: loop body
LE: loop exit
PB: predicated region body
PF: predicated region fallthrough
CT: control target
= control target key end

     0   :  { %v830_v0 = vmov 0.0|0.0   ;;  %vm831_vm0 = vmmov 0   ;;  %v832_v3 = vmov 0.0   ;;  %vm19_vm1 = vcmask 130048   ;;  %s978_s1 = inlined_call_operand.vmem [shape: f32[224,32], index: 1, kind: input, shape index: {}]   ;;  %s979_s0 = inlined_call_operand.vmem [shape: f32[8,16], index: 0, kind: input, shape index: {}]   ;;  %s980_s2 = inlined_call_operand.vmem [shape: f32[8,32], index: 2, kind: output, shape index: {}]  }
   0x1   :  { %790 = vmatprep.subr.bf16.mxu0 %v830_v0  ;;  %v12_v1 = vld [vmem:[%s978_s1] sm:$0xff]  ;;  %v13_v2 = vld [vmem:[%s978_s1 + $0x8] sm:$0xff]  ;;  %722 = vmatprep.mubr.msk.f32.mxu0 %vm831_vm0, %v832_v3  ;;  %v95_v5 = vld [vmem:[%s978_s1 + $0x18] sm:$0xff]  ;;  %vm104_vm2 = vcmask 261120   ;;  %vm413_vm3 = vcmask 64512  }
   0x2   :  { %v791_v4 = vpack.c.bf16 %v13_v2, %v12_v1  ;;  %793 = vmatprep.subr.bf16.mxu1 %v830_v0  ;;  %v96_v6 = vld [vmem:[%s978_s1 + $0x20] sm:$0xff]  ;;  %733 = vmatprep.mubr.msk.f32.mxu1 %vm831_vm0, %v832_v3  ;;  %v178_v9 = vld [vmem:[%s978_s1 + $0x38] sm:$0xff]  ;;  %v97_v12 = vld [vmem:[%s978_s1 + $0x28] sm:$0xff] }
   0x3   :  { %v794_v7 = vpack.c.bf16 %v96_v6, %v95_v5  ;;  %v11_v8 = vld [vmem:[%s979_s0] sm:$0xff]  ;;  %v98_v13 = vld [vmem:[%s978_s1 + $0x30] sm:$0xff]  ;;  %v180_v15 = vld [vmem:[%s978_s1 + $0x48] sm:$0xff] }
   0x4   :  { %792 = vmatpush3.bf16.msra.mxu0 %v791_v4  ;;  %v179_v10 = vld [vmem:[%s978_s1 + $0x40] sm:$0xff]  ;;  %v797_v14 = vpack.c.bf16 %v98_v13, %v97_v12  ;;  %v181_v16 = vld [vmem:[%s978_s1 + $0x50] sm:$0xff]  ;;  %v257_v22 = vld [vmem:[%s978_s1 + $0x58] sm:$0xff] }
   0x5   :  { %795 = vmatpush3.bf16.msra.mxu1 %v794_v7  ;;  %799 = vmatprep.subr.bf16.mxu0 %v830_v0  ;;  %v800_v11 = vpack.c.bf16 %v179_v10, %v178_v9  ;;  %v803_v17 = vpack.c.bf16 %v181_v16, %v180_v15  ;;  %v671_v18 = vld [vmem:[%s978_s1 + $0x10] ss:$0 sm:$0xff]  ;;  %v258_v23 = vld [vmem:[%s978_s1 + $0x60] sm:$0xff]  ;;  %v259_v27 = vld [vmem:[%s978_s1 + $0x68] sm:$0xff] }
   0x6   :  { %796 = vmatprep.subr.bf16.mxu1 %v830_v0  ;;  %v806_v25 = vpack.c.bf16 %v258_v23, %v257_v22  ;;  %v260_v28 = vld [vmem:[%s978_s1 + $0x70] sm:$0xff]  ;;  %v675_v30 = vld [vmem:[%s978_s1 + $0x80] ss:$0 sm:$0xff]  ;;  %v673_v33 = vld [vmem:[%s978_s1 + $0x78] ss:$0 sm:$0xff] }
   0x7   :  { %723 = vmatmul.mubr.msk.f32.vlgmr.msra.gmra.mrb[0].mxu0 %vm19_vm1, %v11_v8  ;;  %v809_v29 = vpack.c.bf16 %v260_v28, %v259_v27  ;;  %v677_v38 = vld [vmem:[%s978_s1 + $0x88] ss:$0 sm:$0xff]  ;;  %v500_v54 = vld [vmem:[%s978_s1 + $0x90] sm:$0xff]  ;;  %v501_v55 = vld [vmem:[%s978_s1 + $0x98] sm:$0xff] }
   0x8   :  { %744 = vmatprep.mubr.msk.f32.mxu0 %vm831_vm0, %v832_v3  ;;  %801 = vmatpush3.bf16.msra.mxu0 %v800_v11  ;;  %v812_v56 = vpack.c.bf16 %v501_v55, %v500_v54  ;;  %v502_v57 = vld [vmem:[%s978_s1 + $0xa0] sm:$0xff]  ;;  %v503_v58 = vld [vmem:[%s978_s1 + $0xa8] sm:$0xff]  ;;  %v584_v2 = vld [vmem:[%s978_s1 + $0xb8] sm:$0xff] }
   0x9   :  { %802 = vmatprep.subr.bf16.mxu0 %v830_v0  ;;  %798 = vmatpush3.bf16.msra.mxu1 %v797_v14  ;;  %v815_v59 = vpack.c.bf16 %v503_v58, %v502_v57  ;;  %v586_v5 = vld [vmem:[%s978_s1 + $0xc8] sm:$0xff]  ;;  %v587_v6 = vld [vmem:[%s978_s1 + $0xd0] sm:$0xff] }
   0xa   :  { %805 = vmatprep.subr.bf16.mxu1 %v830_v0  ;;  %v821_v7 = vpack.c.bf16 %v587_v6, %v586_v5  ;;  %v682_v8 = vld [vmem:[%s978_s1 + $0xb0] ss:$0 sm:$0xff] }
   0xc   :  { %804 = vmatpush3.bf16.msra.mxu0 %v803_v17 }
   0xd   :  { %758 = vmatprep.subr.mxu0 %v832_v3 }
  0xda   :  { %v89_v19 = vpop.f32.mrb[0].mxu0 }
  0xdb   :  { %v90_v20 = vadd.f32 %v671_v18, %v89_v19  ;;  %v724_v21 = vpop.f32.mrb[1].mxu0 }
  0xdd   :  { %v93_v24 = vmul.f32 0.01, %v90_v20 }
  0xdf   :  { %v94_v26 = vmax.f32 %v90_v20, %v93_v24 }
  0xe1   :  { %734 = vmatmul.mubr.msk.f32.vlgmr.msra.gmra.mrb[0].mxu1 %vm104_vm2, %v94_v26  ;;  %745 = vmatmul.mubr.msk.f32.vlgmr.msra.gmra.mrb[2].mxu0 %vm104_vm2, %v94_v26 }
  0xe2   :  { %807 = vmatpush3.bf16.msra.mxu1 %v806_v25  ;;  %755 = vmatprep.mubr.msk.f32.mxu1 %vm831_vm0, %v832_v3 }
  0xe3   :  { %808 = vmatprep.subr.bf16.mxu1 %v830_v0  ;;  %760 = vmatprep.mubr.msk.f32.mxu0 %vm831_vm0, %v832_v3 }
  0xe6   :  { %810 = vmatpush3.bf16.msra.mxu1 %v809_v29 }
  0xe7   :  { %811 = vmatprep.subr.bf16.mxu1 %v830_v0 }
  0xe9   :  { %756 = vmatmul.mubr.msk.f32.vlgmr.msra.gmra.mrb[2].mxu1 %vm104_vm2, %v94_v26 }
  0xea   :  { %776 = vmatprep.mubr.msk.f32.mxu1 %vm831_vm0, %v832_v3  ;;  %813 = vmatpush3.bf16.msra.mxu1 %v812_v56 }
  0xeb   :  { %814 = vmatprep.subr.bf16.mxu1 %v830_v0 }
  0xee   :  { %816 = vmatpush3.bf16.msra.mxu1 %v815_v59 }
 0x1b4   :  { %v174_v31 = vpop.f32.mrb[0].mxu1  ;;  %v253_v32 = vpop.f32.mrb[2].mxu0 }
 0x1b5   :  { %v254_v34 = vadd.f32 %v675_v30, %v253_v32  ;;  %v735_v35 = vpop.f32.mrb[1].mxu1  ;;  %v746_v36 = vpop.f32.mrb[3].mxu0  ;;  %v175_v37 = vadd.f32 %v673_v33, %v174_v31 }
 0x1b7   :  { %759 = vmatpush3.xpose.msk.msra.mxu0 %vm104_vm2, %v254_v34 }
 0x1b8   :  { %763 = vmatprep.subr.mxu0 %v832_v3 }
 0x1ba   :  { %761 = vmatmul.mubr.msk.f32.vlgmr.msra.gmra.mrb[4].mxu0 %vm104_vm2, %v175_v37 }
 0x1bb   :  { %765 = vmatprep.mubr.msk.f32.mxu0 %vm831_vm0, %v832_v3 }
 0x1bc   :  { %v332_v39 = vpop.f32.mrb[2].mxu1 }
 0x1bd   :  { %v333_v40 = vadd.f32 %v677_v38, %v332_v39  ;;  %v757_v41 = vpop.f32.mrb[3].mxu1 }
 0x1bf   :  { %764 = vmatpush3.msra.mxu0 %v333_v40 }
 0x1c0   :  { %817 = vmatprep.subr.bf16.mxu0 %v830_v0 }
 0x28d   :  { %v408_v42 = vpop.f32.mrb[4].mxu0 }
 0x28e   :  { %v412_v43 = vmul.f32 0.17677669, %v408_v42  ;;  %v762_v44 = vpop.f32.mrb[5].mxu0 }
 0x290   :  { %v414_v45 = vsel %vm413_vm3, %v412_v43, -inf }
 0x291   :  { %415 = vmax.xlane.f32.xlu0 %v414_v45 }
 0x31e   :  { %v416_v46 = vpop.xlane.xlu0 %415 }
 0x31f   :  { %v417_v47 = vsub.f32 %v412_v43, %v416_v46 }
 0x321   :  { %v418_v48 = vmul.f32 1.442695, %v417_v47 }
 0x323   :  { %826 = vpow2.f32 %v418_v48 }
 0x32d   :  { %v827_v49 = vpop.eup %826 }
 0x32e   :  { %v420_v50 = vsel %vm413_vm3, %v827_v49, 0.0 }
 0x32f   :  { %421 = vadd.xlane.f32.xlu0 %v420_v50 }
 0x3bc   :  { %v422_v51 = vpop.xlane.xlu0 %421 }
 0x3bd   :  { %828 = vrcp.f32 %v422_v51 }
 0x3c7   :  { %v829_v52 = vpop.eup %828 }
 0x3c8   :  { %v424_v53 = vmul.f32 %v829_v52, %v827_v49 }
 0x3ca   :  { %766 = vmatmul.mubr.msk.f32.vlgmr.msra.gmra.mrb[6].mxu0 %vm413_vm3, %v424_v53 }
 0x3cb   :  { %787 = vmatprep.mubr.msk.f32.mxu0 %vm831_vm0, %v832_v3  ;;  %v585_v3 = vld [vmem:[%s978_s1 + $0xc0] sm:$0xff] }
 0x3cc   :  { %v818_v4 = vpack.c.bf16 %v585_v3, %v584_v2 }
 0x3ce   :  { %819 = vmatpush3.bf16.msra.mxu0 %v818_v4 }
 0x3cf   :  { %820 = vmatprep.subr.bf16.mxu0 %v830_v0  ;;  %v684_v0 = vld [vmem:[%s978_s1 + $0xd8] ss:$0 sm:$0xff] }
 0x3d2   :  { %822 = vmatpush3.bf16.msra.mxu0 %v821_v7 }
 0x49d   :  { %v494_v60 = vpop.f32.mrb[6].mxu0 }
 0x49e   :  { %v495_v61 = vadd.f32 %v494_v60, %v94_v26  ;;  %v767_v62 = vpop.f32.mrb[7].mxu0 }
 0x4a0   :  { %v498_v63 = vmul.f32 0.01, %v495_v61 }
 0x4a2   :  { %v499_v1 = vmax.f32 %v495_v61, %v498_v63 }
 0x4a4   :  { %777 = vmatmul.mubr.msk.f32.vlgmr.msra.gmra.mrb[4].mxu1 %vm104_vm2, %v499_v1 }
 0x577   :  { %v578_v9 = vpop.f32.mrb[4].mxu1 }
 0x578   :  { %v579_v10 = vadd.f32 %v682_v8, %v578_v9  ;;  %v778_v11 = vpop.f32.mrb[5].mxu1 }
 0x57a   :  { %v582_v12 = vmul.f32 0.01, %v579_v10 }
 0x57c   :  { %v583_v13 = vmax.f32 %v579_v10, %v582_v12 }
 0x57e   :  { %788 = vmatmul.mubr.msk.f32.vlgmr.msra.gmra.mrb[8].mxu0 %vm104_vm2, %v583_v13 }
 0x651   :  { %v662_v14 = vpop.f32.mrb[8].mxu0 }
 0x652   :  { %v663_v15 = vadd.f32 %v684_v0, %v662_v14  ;;  %v789_v16 = vpop.f32.mrb[9].mxu0 }
 0x654   :  { %666 = vst.msk [vmem:[%s980_s2] sm:$0xff] %vm104_vm2, %v663_v15 }

</bundles_post_ra>
